<compile_context>
chip_gen: v7x
topology: tpu7x:2x2x1
jax: 0.10.0
libtpu: 0.0.40
codegen_flags: <defaults>
</compile_context>

<pallas_src>
import functools
import math

import jax
import jax.numpy as jnp
from jax.experimental import pallas as pl
from jax.experimental.pallas import tpu as pltpu


# ----------------------------------------------------------------------------
# Fused kernel: cv1 (3x3, taps folded into K) -> SiLU -> cv2 (1x1) -> SiLU
#               -> optional residual add.  One (C2, TILE_HW) output slab per
#               grid step, lane axis = HW.
# ----------------------------------------------------------------------------
def _rbottleneck_kernel(*refs, add):
    if add:
        xt_ref, w1_ref, b1_ref, w2_ref, b2_ref, res_ref, o_ref = refs
    else:
        xt_ref, w1_ref, b1_ref, w2_ref, b2_ref, o_ref = refs
        res_ref = None

    # cv1: SiLU(W1 @ Xtaps + b1)  ->  (C_, T), single K = k*k*C1 MXU matmul
    y1 = jnp.dot(w1_ref[...], xt_ref[0], preferred_element_type=jnp.float32)
    y1 = y1 + b1_ref[...]                    # folded BN bias, f32
    y1 = y1 * jax.nn.sigmoid(y1)             # SiLU in f32 (EUP)

    # cv2 (1x1): SiLU(W2 @ y1 + b2)  ->  (C2, T)
    y2 = jnp.dot(w2_ref[...], y1.astype(jnp.bfloat16),
                 preferred_element_type=jnp.float32)
    y2 = y2 + b2_ref[...]
    y2 = y2 * jax.nn.sigmoid(y2)

    if add:
        y2 = y2 + res_ref[0].astype(jnp.float32)   # shortcut after cv2's SiLU
    o_ref[0] = y2.astype(o_ref.dtype)              # lane-dense store (T on lanes)


# ----------------------------------------------------------------------------
# JAX glue
# ----------------------------------------------------------------------------
def _extract_taps_chw(x_nchw, k):
    """(N, C, H, W) -> (N, k*k*C, H*W), taps ordered (dy, dx) major, C minor."""
    n, c, h, w = x_nchw.shape
    if k == 1:
        return x_nchw.reshape(n, c, h * w)
    p = k // 2
    xp = jnp.pad(x_nchw, ((0, 0), (0, 0), (p, p), (p, p)))
    taps = [
        xp[:, :, dy:dy + h, dx:dx + w].reshape(n, c, h * w)
        for dy in range(k) for dx in range(k)
    ]
    # TODO(synk): taps could be formed in-kernel from a padded block to avoid
    # the k*k HBM expansion; kept in glue (bf16) for lowering robustness.
    return jnp.concatenate(taps, axis=1)


def _pick_hw_tile(hw):
    """Largest lane-aligned HW tile that still gives >=2 grid steps."""
    for t in (1024, 512, 256, 128):
        if hw % t == 0 and hw // t >= 2:
            return t
    for t in (1024, 512, 256, 128):
        if hw % t == 0:
            return t
    return hw


def rbottleneck_forward(params, x_nchw):
    """x_nchw: (N, C1, H, W) -> (N, C2, H, W), matching PyTorch RBottleneckBase."""
    n, c1, h, w = x_nchw.shape
    hw = h * w
    cv1, cv2 = params["cv1"], params["cv2"]
    add = params["add"]
    assert cv2["k"] == 1, "cv2 is a 1x1 conv for the default k=(3, 1)"
    c2 = cv2["w"].shape[0]
    kk_c1 = cv1["w"].shape[1]

    xt = _extract_taps_chw(x_nchw, cv1["k"]).astype(jnp.bfloat16)  # (N, kkC1, HW)
    tile = _pick_hw_tile(hw)
    grid = (n, hw // tile)

    args = [xt, cv1["w"], cv1["b"], cv2["w"], cv2["b"]]
    in_specs = [
        pl.BlockSpec((1, kk_c1, tile), lambda i, j: (i, 0, j)),
        pl.BlockSpec(cv1["w"].shape, lambda i, j: (0, 0)),   # resident weights
        pl.BlockSpec(cv1["b"].shape, lambda i, j: (0, 0)),
        pl.BlockSpec(cv2["w"].shape, lambda i, j: (0, 0)),
        pl.BlockSpec(cv2["b"].shape, lambda i, j: (0, 0)),
    ]
    if add:
        args.append(x_nchw.reshape(n, c1, hw))               # residual (f32)
        in_specs.append(pl.BlockSpec((1, c1, tile), lambda i, j: (i, 0, j)))

    out = pl.pallas_call(
        functools.partial(_rbottleneck_kernel, add=add),
        out_shape=jax.ShapeDtypeStruct((n, c2, hw), x_nchw.dtype),
        grid=grid,
        in_specs=in_specs,
        out_specs=pl.BlockSpec((1, c2, tile), lambda i, j: (i, 0, j)),
        compiler_params=pltpu.CompilerParams(
            dimension_semantics=("parallel", "parallel")),
    )(*args)
    return out.reshape(n, c2, h, w)


# ----------------------------------------------------------------------------
# Deterministic parameters: Conv2d weight (no bias) + eval-mode BatchNorm
# folded into the weight / per-channel bias; weight reshaped to the tap-major
# matmul layout and pre-cast to bf16 once.
# ----------------------------------------------------------------------------
def _make_conv_params(key, cin, cout, k):
    kw, kg, kb, km, kv = jax.random.split(key, 5)
    w = jax.random.normal(kw, (cout, cin, k, k), jnp.float32) / math.sqrt(cin * k * k)
    gamma = 1.0 + 0.1 * jax.random.normal(kg, (cout,), jnp.float32)
    beta = 0.1 * jax.random.normal(kb, (cout,), jnp.float32)
    mean = 0.1 * jax.random.normal(km, (cout,), jnp.float32)
    var = 1.0 + 0.5 * jax.random.uniform(kv, (cout,), jnp.float32)
    eps = 1e-5                                   # nn.BatchNorm2d default
    scale = gamma / jnp.sqrt(var + eps)
    w_folded = w * scale[:, None, None, None]    # fold BN scale into conv weight
    # (Cout, Cin, kh, kw) -> (Cout, kh, kw, Cin) -> (Cout, k*k*Cin) tap-major
    w_mat = jnp.transpose(w_folded, (0, 2, 3, 1)).reshape(cout, k * k * cin)
    return {
        "w": w_mat.astype(jnp.bfloat16),         # MXU operand
        "w_oihw": w_folded,                      # f32, reference check only
        "b": (beta - mean * scale).reshape(cout, 1),
        "k": k,
    }


def make_rbottleneck_params(key, c1, c2, shortcut=True, e=0.5, k=(3, 1)):
    c_ = int(c2 * e)
    k1, k2 = jax.random.split(key)
    return {
        "cv1": _make_conv_params(k1, c1, c_, k[0]),
        "cv2": _make_conv_params(k2, c_, c2, k[1]),
        "add": bool(shortcut and c1 == c2),
    }


# ----------------------------------------------------------------------------
# Pure-JAX f32 reference (eval-mode PyTorch semantics) for a tolerance check.
# ----------------------------------------------------------------------------
def _reference_forward(params, x):
    def conv_bn_silu(x, p):
        y = jax.lax.conv_general_dilated(
            x, p["w_oihw"], window_strides=(1, 1), padding="SAME",
            dimension_numbers=("NCHW", "OIHW", "NCHW"))
        y = y + p["b"].reshape(1, -1, 1, 1)
        return y * jax.nn.sigmoid(y)

    y = conv_bn_silu(conv_bn_silu(x, params["cv1"]), params["cv2"])
    return x + y if params["add"] else y


# ----------------------------------------------------------------------------
if __name__ == "__main__":
    key = jax.random.PRNGKey(0)
    kp, kx = jax.random.split(key)

    # RBottleneckBase(c1=16, c2=16, shortcut=True, g=1, k=(3, 1), e=0.5) -> c_ = 8
    c1 = c2 = 16
    params = make_rbottleneck_params(kp, c1, c2, shortcut=True, e=0.5, k=(3, 1))

    # PyTorch-style NCHW input
    x = jax.random.normal(kx, (2, c1, 16, 16), jnp.float32)

    fwd = jax.jit(functools.partial(rbottleneck_forward, params))
    out = jax.block_until_ready(fwd(x))

    assert out.shape == (2, c2, 16, 16), out.shape
    assert bool(jnp.all(jnp.isfinite(out)))

    ref = _reference_forward(params, x)
    err = float(jnp.max(jnp.abs(out - ref)))
    assert err < 0.1, err   # bf16 MXU operands vs f32 reference (f32 accumulation)
    print("KERNEL_OK")
</pallas_src>

<mosaic_0001>
module attributes {stable_mosaic.version = 11 : i64} {
  func.func @_rbottleneck_kernel(%arg0: i32, %arg1: i32, %arg2: memref<1x144x128xbf16, #tpu.memory_space<vmem>>, %arg3: memref<8x144xbf16, #tpu.memory_space<vmem>>, %arg4: memref<8x1xf32, #tpu.memory_space<vmem>>, %arg5: memref<16x8xbf16, #tpu.memory_space<vmem>>, %arg6: memref<16x1xf32, #tpu.memory_space<vmem>>, %arg7: memref<1x16x128xf32, #tpu.memory_space<vmem>>, %arg8: memref<1x16x128xf32, #tpu.memory_space<vmem>>) attributes {dimension_semantics = [#tpu.dimension_semantics<parallel>, #tpu.dimension_semantics<parallel>], iteration_bounds = array<i64: 2, 2>, scalar_prefetch = 0 : i64, scratch_operands = 0 : i64, tpu.core_type = #tpu.core_type<tc>, window_params = [{transform_indices = @transform_0, window_bounds = array<i64: 1, 144, 128>}, {pipeline_mode = #tpu.pipeline_mode<synchronous>, transform_indices = @transform_1, window_bounds = array<i64: 8, 144>}, {pipeline_mode = #tpu.pipeline_mode<synchronous>, transform_indices = @transform_2, window_bounds = array<i64: 8, 1>}, {pipeline_mode = #tpu.pipeline_mode<synchronous>, transform_indices = @transform_3, window_bounds = array<i64: 16, 8>}, {pipeline_mode = #tpu.pipeline_mode<synchronous>, transform_indices = @transform_4, window_bounds = array<i64: 16, 1>}, {transform_indices = @transform_5, window_bounds = array<i64: 1, 16, 128>}, {transform_indices = @transform_6, window_bounds = array<i64: 1, 16, 128>}]} {
    %c0 = arith.constant 0 : index
    %c0_0 = arith.constant 0 : index
    %0 = vector.load %arg3[%c0, %c0_0] : memref<8x144xbf16, #tpu.memory_space<vmem>>, vector<8x144xbf16>
    %c0_1 = arith.constant 0 : index
    %c0_2 = arith.constant 0 : index
    %c0_3 = arith.constant 0 : index
    %1 = vector.load %arg2[%c0_1, %c0_2, %c0_3] : memref<1x144x128xbf16, #tpu.memory_space<vmem>>, vector<1x144x128xbf16>
    %2 = vector.shape_cast %1 : vector<1x144x128xbf16> to vector<144x128xbf16>
    %cst = arith.constant dense<0.000000e+00> : vector<8x128xf32>
    %3 = tpu.matmul %0, %2, %cst {dimension_numbers = #tpu.dot_dimension_numbers<[1], [0], [0], [1], [0, 0, 1, 1], [], []>} : vector<8x144xbf16>, vector<144x128xbf16>, vector<8x128xf32> -> vector<8x128xf32>
    %c0_4 = arith.constant 0 : index
    %c0_5 = arith.constant 0 : index
    %4 = vector.load %arg4[%c0_4, %c0_5] : memref<8x1xf32, #tpu.memory_space<vmem>>, vector<8x1xf32>
    %5 = vector.broadcast %4 : vector<8x1xf32> to vector<8x128xf32>
    %6 = arith.addf %3, %5 : vector<8x128xf32>
    %7 = arith.negf %6 : vector<8x128xf32>
    %8 = math.exp %7 : vector<8x128xf32>
    %cst_6 = arith.constant 1.000000e+00 : f32
    %9 = vector.broadcast %cst_6 : f32 to vector<8x128xf32>
    %10 = arith.addf %9, %8 : vector<8x128xf32>
    %11 = arith.divf %9, %10 : vector<8x128xf32>
    %12 = arith.mulf %6, %11 : vector<8x128xf32>
    %c0_7 = arith.constant 0 : index
    %c0_8 = arith.constant 0 : index
    %13 = vector.load %arg5[%c0_7, %c0_8] : memref<16x8xbf16, #tpu.memory_space<vmem>>, vector<16x8xbf16>
    %14 = arith.truncf %12 : vector<8x128xf32> to vector<8x128xbf16>
    %cst_9 = arith.constant dense<0.000000e+00> : vector<16x128xf32>
    %15 = tpu.matmul %13, %14, %cst_9 {dimension_numbers = #tpu.dot_dimension_numbers<[1], [0], [0], [1], [0, 0, 1, 1], [], []>} : vector<16x8xbf16>, vector<8x128xbf16>, vector<16x128xf32> -> vector<16x128xf32>
    %c0_10 = arith.constant 0 : index
    %c0_11 = arith.constant 0 : index
    %16 = vector.load %arg6[%c0_10, %c0_11] : memref<16x1xf32, #tpu.memory_space<vmem>>, vector<16x1xf32>
    %17 = vector.broadcast %16 : vector<16x1xf32> to vector<16x128xf32>
    %18 = arith.addf %15, %17 : vector<16x128xf32>
    %19 = arith.negf %18 : vector<16x128xf32>
    %20 = math.exp %19 : vector<16x128xf32>
    %cst_12 = arith.constant 1.000000e+00 : f32
    %21 = vector.broadcast %cst_12 : f32 to vector<16x128xf32>
    %22 = arith.addf %21, %20 : vector<16x128xf32>
    %23 = arith.divf %21, %22 : vector<16x128xf32>
    %24 = arith.mulf %18, %23 : vector<16x128xf32>
    %c0_13 = arith.constant 0 : index
    %c0_14 = arith.constant 0 : index
    %c0_15 = arith.constant 0 : index
    %25 = vector.load %arg7[%c0_13, %c0_14, %c0_15] : memref<1x16x128xf32, #tpu.memory_space<vmem>>, vector<1x16x128xf32>
    %26 = vector.shape_cast %25 : vector<1x16x128xf32> to vector<16x128xf32>
    %27 = arith.addf %24, %26 : vector<16x128xf32>
    %c0_16 = arith.constant 0 : index
    %c0_17 = arith.constant 0 : index
    %c0_18 = arith.constant 0 : index
    %28 = vector.load %arg8[%c0_16, %c0_17, %c0_18] : memref<1x16x128xf32, #tpu.memory_space<vmem>>, vector<1x16x128xf32>
    %29 = vector.shape_cast %28 : vector<1x16x128xf32> to vector<16x128xf32>
    %30 = vector.shape_cast %27 : vector<16x128xf32> to vector<1x16x128xf32>
    tpu.vector_store %arg8[%c0_16, %c0_17, %c0_18], %30 {strides = array<i32>} : memref<1x16x128xf32, #tpu.memory_space<vmem>>, vector<1x16x128xf32>,
    return
  }
  func.func @transform_0(%arg0: i32, %arg1: i32) -> (i32, i32, i32) {
    %c0_i32 = arith.constant 0 : i32
    %c0_i32_0 = arith.constant 0 : i32
    return %arg0, %c0_i32, %arg1 : i32, i32, i32
  }
  func.func @transform_1(%arg0: i32, %arg1: i32) -> (i32, i32) {
    %c0_i32 = arith.constant 0 : i32
    %c0_i32_0 = arith.constant 0 : i32
    %c0_i32_1 = arith.constant 0 : i32
    return %c0_i32, %c0_i32_0 : i32, i32
  }
  func.func @transform_2(%arg0: i32, %arg1: i32) -> (i32, i32) {
    %c0_i32 = arith.constant 0 : i32
    %c0_i32_0 = arith.constant 0 : i32
    %c0_i32_1 = arith.constant 0 : i32
    return %c0_i32, %c0_i32_0 : i32, i32
  }
  func.func @transform_3(%arg0: i32, %arg1: i32) -> (i32, i32) {
    %c0_i32 = arith.constant 0 : i32
    %c0_i32_0 = arith.constant 0 : i32
    %c0_i32_1 = arith.constant 0 : i32
    return %c0_i32, %c0_i32_0 : i32, i32
  }
  func.func @transform_4(%arg0: i32, %arg1: i32) -> (i32, i32) {
    %c0_i32 = arith.constant 0 : i32
    %c0_i32_0 = arith.constant 0 : i32
    %c0_i32_1 = arith.constant 0 : i32
    return %c0_i32, %c0_i32_0 : i32, i32
  }
  func.func @transform_5(%arg0: i32, %arg1: i32) -> (i32, i32, i32) {
    %c0_i32 = arith.constant 0 : i32
    %c0_i32_0 = arith.constant 0 : i32
    return %arg0, %c0_i32, %arg1 : i32, i32, i32
  }
  func.func @transform_6(%arg0: i32, %arg1: i32) -> (i32, i32, i32) {
    %c0_i32 = arith.constant 0 : i32
    %c0_i32_0 = arith.constant 0 : i32
    return %arg0, %c0_i32, %arg1 : i32, i32, i32
  }
}

</mosaic_0001>

<bundles_post_ra>
// kernel: rbottleneck_forward.1
= control target key start
LH: loop header
LB: loop body
LE: loop exit
PB: predicated region body
PF: predicated region fallthrough
CT: control target
= control target key end

     0   :  { %s1023_s21 = smov 0   ;;  %s1025_s22 = smov 0   ;;  %s1192_s0 = inlined_call_operand.vmem [shape: bf16[2,144,256], index: 0, kind: input, shape index: {}]   ;;  %s1193_s1 = inlined_call_operand.vmem [shape: bf16[8,144], index: 1, kind: input, shape index: {}]   ;;  %s1194_s2 = inlined_call_operand.vmem [shape: f32[8,1], index: 2, kind: input, shape index: {}]   ;;  %s1195_s3 = inlined_call_operand.vmem [shape: bf16[16,8], index: 3, kind: input, shape index: {}]   ;;  %s1196_s4 = inlined_call_operand.vmem [shape: f32[16,1], index: 4, kind: input, shape index: {}]   ;;  %s1197_s5 = inlined_call_operand.vmem [shape: f32[2,16,256], index: 5, kind: input, shape index: {}]   ;;  %s1198_s6 = inlined_call_operand.vmem [shape: f32[2,16,256], index: 6, kind: output, shape index: {}]  }
   0x1   :  { %s1027_s23 = smov 0   ;;  %s1029_s24 = smov 0  }
   0x2   :  { %s1031_s25 = smov 0   ;;  %s1033_s26 = smov 0  }
   0x3   :  { %s1035_s27 = smov 0  }
   0x4 LB: > { %s25_s28 = sadd.s32 1, %s975_s25  ;;  %s28_s29 = sadd.s32 1, %s979_s26  ;;  %s983_s27 = sphi %s1035_s27, %s16_s27   ;;  %s979_s26 = sphi %s1033_s26, %s1206_s26   ;;  %s975_s25 = sphi %s1031_s25, %s1205_s25   ;;  %s971_s24 = sphi %s1029_s24, %s1204_s24   ;;  %s967_s23 = sphi %s1027_s23, %s1203_s23   ;;  %s963_s22 = sphi %s1025_s22, %s1202_s22   ;;  %s959_s21 = sphi %s1023_s21, %s1201_s21  }
   0x5   : > { %p26_p0 = scmp.ge.s32.totalorder %s25_s28, 2  ;;  %s800_s30 = sadd.s32 4294967295, %s983_s27  }
   0x6   : > { %p44_p1 = scmp.ne.s32.totalorder %s963_s22, %s959_s21  ;;  %p45_p2 = scmp.eq.s32.totalorder %s983_s27, 0 }
   0x7   : > { %s1208_s28 = smov (%p26_p0, %s25_s28), 0  ;;  %s1210_s29 = smov (!%p26_p0, %s28_s29), %s979_s26 }
   0x8   : > { %p30_p3 = scmp.ge.s32.totalorder %s1210_s29, 2  ;;  %p188_p4 = scmp.eq.s32.totalorder %s800_s30, 3 }
   0x9   : > { %s33_s7 = ssub.s32 %s975_s25, %s1208_s28  ;;  %p1069_p5 = por %p45_p2, %p44_p1 }
   0xa   : > { %s1212_s29 = smov (%p30_p3, %s1210_s29), 0  ;;  %p1075_p6 = por %p188_p4, %p44_p1 }
   0xb   : > { %s32_s10 = ssub.s32 %s979_s26, %s1212_s29  ;;  %s37_s12 = sadd.s32 1, %s963_s22 }
   0xc   : > { %s34_s11 = sor.u32 %s33_s7, %s32_s10  ;;  %p803_p8 = scmp.ge.s32.totalorder %s983_s27, 4 }
   0xd   : > { %p35_p7 = scmp.eq.s32.totalorder %s34_s11, 0 }
   0xe   : > { %222 = sbr.rel (%p803_p8) target bundleno = 47 (0x2f), region = 32 }
   0xf   : > { %s1083_s13 = scalar_select %p35_p7, %s963_s22, %s37_s12  }
  0x15   : > { %225 = sbr.rel (!%p1069_p5) target bundleno = 40 (0x28), region = 36  ;;  %s227_s14 = sand.u32 (%p1069_p5), 1, %s963_s22  }
  0x16   : > { %s842_s15 = smul.u32 (%p1069_p5), 36, %s979_s26 }
  0x17   : > { %s841_s16 = smul.u32 (%p1069_p5), 72, %s227_s14 }
  0x18   : > { %s231_s17 = sadd.s32 (%p1069_p5), %s975_s25, %s842_s15 }
  0x19   : > { %s804_s18 = sshll.u32 (%p1069_p5), %s231_s17, 2  ;;  %s1099_s7 = scalar_lea.vmem (%p1069_p5), [#allocation2], %s841_s16 }
  0x1a   : > { %s1094_s30 = scalar_lea.vmem (%p1069_p5), %s1192_s0, %s804_s18 }
  0x1b   : > { %v249_v0 = vld [vmem:[%s1094_s30] sm:$0xf] (%p1069_p5)  ;;  %v251_v1 = vld [vmem:[%s1094_s30 + $0x8] sm:$0xf] (%p1069_p5)  ;;  %v253_v2 = vld [vmem:[%s1094_s30 + $0x10] sm:$0xf] (%p1069_p5) }
  0x1c   : > { %250 = vst [vmem:[%s1099_s7] sm:$0xf] %v249_v0  ;;  %252 = vst [vmem:[%s1099_s7 + $0x4] sm:$0xf] %v251_v1  ;;  %v255_v3 = vld [vmem:[%s1094_s30 + $0x18] sm:$0xf] }
  0x1d   : > { %254 = vst [vmem:[%s1099_s7 + $0x8] sm:$0xf] %v253_v2  ;;  %v257_v4 = vld [vmem:[%s1094_s30 + $0x20] sm:$0xf]  ;;  %v259_v5 = vld [vmem:[%s1094_s30 + $0x28] sm:$0xf] }
  0x1e   : > { %256 = vst [vmem:[%s1099_s7 + $0xc] sm:$0xf] %v255_v3  ;;  %258 = vst [vmem:[%s1099_s7 + $0x10] sm:$0xf] %v257_v4  ;;  %v261_v6 = vld [vmem:[%s1094_s30 + $0x30] sm:$0xf] }
  0x1f   : > { %260 = vst [vmem:[%s1099_s7 + $0x14] sm:$0xf] %v259_v5  ;;  %v263_v7 = vld [vmem:[%s1094_s30 + $0x38] sm:$0xf]  ;;  %v265_v8 = vld [vmem:[%s1094_s30 + $0x40] sm:$0xf] }
  0x20   : > { %262 = vst [vmem:[%s1099_s7 + $0x18] sm:$0xf] %v261_v6  ;;  %264 = vst [vmem:[%s1099_s7 + $0x1c] sm:$0xf] %v263_v7  ;;  %v267_v9 = vld [vmem:[%s1094_s30 + $0x48] sm:$0xf] }
  0x21   : > { %266 = vst [vmem:[%s1099_s7 + $0x20] sm:$0xf] %v265_v8  ;;  %v269_v10 = vld [vmem:[%s1094_s30 + $0x50] sm:$0xf]  ;;  %v271_v11 = vld [vmem:[%s1094_s30 + $0x58] sm:$0xf] }
  0x22   : > { %268 = vst [vmem:[%s1099_s7 + $0x24] sm:$0xf] %v267_v9  ;;  %270 = vst [vmem:[%s1099_s7 + $0x28] sm:$0xf] %v269_v10  ;;  %v273_v12 = vld [vmem:[%s1094_s30 + $0x60] sm:$0xf] }
  0x23   : > { %272 = vst [vmem:[%s1099_s7 + $0x2c] sm:$0xf] %v271_v11  ;;  %v275_v13 = vld [vmem:[%s1094_s30 + $0x68] sm:$0xf]  ;;  %v277_v14 = vld [vmem:[%s1094_s30 + $0x70] sm:$0xf] }
  0x24   : > { %274 = vst [vmem:[%s1099_s7 + $0x30] sm:$0xf] %v273_v12  ;;  %276 = vst [vmem:[%s1099_s7 + $0x34] sm:$0xf] %v275_v13  ;;  %v279_v15 = vld [vmem:[%s1094_s30 + $0x78] sm:$0xf] }
  0x25   : > { %278 = vst [vmem:[%s1099_s7 + $0x38] sm:$0xf] %v277_v14  ;;  %v281_v16 = vld [vmem:[%s1094_s30 + $0x80] sm:$0xf]  ;;  %v283_v17 = vld [vmem:[%s1094_s30 + $0x88] sm:$0xf] }
  0x26   : > { %280 = vst [vmem:[%s1099_s7 + $0x3c] sm:$0xf] %v279_v15  ;;  %282 = vst [vmem:[%s1099_s7 + $0x40] sm:$0xf] %v281_v16 }
  0x27   : > { %284 = vst [vmem:[%s1099_s7 + $0x44] sm:$0xf] %v283_v17 }
  0x28 PF: > { %343 = sbr.rel (!%p1069_p5) target bundleno = 47 (0x2f), region = 77  ;;  %s345_s10 = sand.u32 (%p1069_p5), 1, %s963_s22  }
  0x29   : > { %s806_s11 = sshll.u32 (%p1069_p5), %s979_s26, 2  ;;  %s805_s12 = sshll.u32 (%p1069_p5), %s345_s10, 4 }
  0x2a   : > { %s349_s14 = sadd.s32 (%p1069_p5), %s975_s25, %s806_s11  ;;  %s347_s19 = scalar_lea.vmem (%p1069_p5), [#allocation3], %s805_s12 }
  0x2b   : > { %s807_s15 = sshll.u32 (%p1069_p5), %s349_s14, 3 }
  0x2c   : > { %s351_s18 = scalar_lea.vmem (%p1069_p5), %s1197_s5, %s807_s15 }
  0x2d   : > { %v381_v18 = vld [vmem:[%s351_s18] sm:$0xff] (%p1069_p5)  ;;  %v383_v19 = vld [vmem:[%s351_s18 + $0x10] sm:$0xff] (%p1069_p5) }
  0x2e   : > { %382 = vst [vmem:[%s347_s19] sm:$0xff] (%p1069_p5), %v381_v18  ;;  %384 = vst [vmem:[%s347_s19 + $0x8] sm:$0xff] (%p1069_p5), %v383_v19 }
  0x2f PF: > { %p808_p9 = scmp.ge.s32.totalorder %s983_s27, 1  ;;  %p389_p10 = scmp.lt.s32.totalorder %s983_s27, 5 }
  0x31   : > { %p390_p11 = pnand %p808_p9, %p389_p10 }
  0x32   : > { %s396_s8 = sand.u32 (!%p390_p11), 1, %s959_s21   ;;  %v436_v20 = vld [vmem:[%s1193_s1] sm:$0xff] (!%p390_p11)  ;;  %vm521_vm0 = vcmask (!%p390_p11), 130048   ;;  %v985_v22 = vmov (!%p390_p11), 0   ;;  %v986_v35 = vmov (!%p390_p11), 0.0   ;;  %vm987_vm1 = vmmov (!%p390_p11), 0  }
  0x33   : > { %393 = sbr.rel (%p390_p11) target bundleno = 594 (0x252), region = 115  ;;  %v455_v21 = vld [vmem:[%s1194_s2] sm:$0xff] (!%p390_p11)  ;;  %525 = vmatprep.subr.bf16.mxu0 (!%p390_p11), %v985_v22  ;;  %v812_v23 = vcombine.high (!%p390_p11), %v436_v20, %v436_v20  ;;  %903 = vset.pattern.permute.xlu0 (!%p390_p11), %v985_v22  ;;  %v811_v34 = vcombine.low (!%p390_p11), %v436_v20, %v436_v20  ;;  %v576_v36 = vld [vmem:[%s1196_s4 + $0x8] sm:$0xff] (!%p390_p11)  ;;  %vm596_vm2 = vcmask (!%p390_p11), 1043456   ;;  %vm592_vm3 = vcmask (!%p390_p11), 64512   ;;  %s809_s20 = sshll.u32 (!%p390_p11), %s396_s8, 4 }
  0x34   : > { %s843_s11 = smul.u32 (!%p390_p11), 72, %s396_s8  ;;  %458 = vperm.xlu0 (!%p390_p11), %903, %v455_v21   ;;  %904 = vset.pattern.permute.xlu1 (!%p390_p11), %v985_v22  ;;  %v575_v24 = vld [vmem:[%s1196_s4] sm:$0xff] (!%p390_p11)  ;;  %s405_s30 = scalar_lea.vmem (!%p390_p11), [#allocation3], %s809_s20 }
  0x35   : > { %822 = vmatprep.mubr.msk.bf16.mxu0 (!%p390_p11), %vm521_vm0, %v812_v23  ;;  %835 = vmatprep.subr.bf16.mxu1 (!%p390_p11), %v986_v35  ;;  %v916_v50 = vld [vmem:[%s1195_s3] sm:$0xff] (!%p390_p11)   ;;  %v656_v5 = vld [vmem:[%s405_s30 + $0x8] sm:$0xff] (!%p390_p11)  ;;  %s434_s7 = scalar_lea.vmem (!%p390_p11), [#allocation4], %s809_s20 }
  0x36   : > { %s398_s15 = scalar_lea.vmem (!%p390_p11), [#allocation2], %s843_s11  ;;  %837 = vmatprep.mubr.msk.bf16.mxu1 (!%p390_p11), %vm987_vm1, %v986_v35  ;;  %584 = vperm.xlu1 (!%p390_p11), %904, %v576_v36   ;;  %v655_v2 = vld [vmem:[%s405_s30] sm:$0xff] (!%p390_p11) }
  0x37   : > { %v905_v25 = vld [vmem:[%s398_s15] sm:$0xff] (!%p390_p11)   ;;  %v906_v26 = vld [vmem:[%s398_s15 + $0x8] sm:$0xff] (!%p390_p11)   ;;  %v907_v27 = vld [vmem:[%s398_s15 + $0x10] sm:$0xff] (!%p390_p11)  }
  0x38   : > { %526 = vmatpush1.bf16.msra.mxu0 (!%p390_p11), %v905_v25  ;;  %579 = vperm.xlu0 (!%p390_p11), %903, %v575_v24   ;;  %v908_v28 = vld [vmem:[%s398_s15 + $0x18] sm:$0xff] (!%p390_p11)   ;;  %v909_v29 = vld [vmem:[%s398_s15 + $0x20] sm:$0xff] (!%p390_p11)   ;;  %v910_v30 = vld [vmem:[%s398_s15 + $0x28] sm:$0xff] (!%p390_p11)  }
  0x39   : > { %527 = vmatprep.subr.bf16.mxu0 (!%p390_p11), %v985_v22  ;;  %v911_v31 = vld [vmem:[%s398_s15 + $0x30] sm:$0xff] (!%p390_p11)   ;;  %v912_v32 = vld [vmem:[%s398_s15 + $0x38] sm:$0xff] (!%p390_p11)   ;;  %v913_v33 = vld [vmem:[%s398_s15 + $0x40] sm:$0xff] (!%p390_p11)  }
  0x3a   : > { %s829_s10 = sshll.u32 (%p1075_p6), %s971_s24, 2 }
  0x3b   : > { %s669_s21 = sadd.s32 (%p1075_p6), %s967_s23, %s829_s10 }
  0x3c   : > { %528 = vmatpush1.bf16.msra.mxu0 %v906_v26  ;;  %s830_s8 = sshll.u32 (%p1075_p6), %s669_s21, 3 }
  0x3d   : > { %529 = vmatprep.subr.bf16.mxu0 %v985_v22  ;;  %s671_s14 = scalar_lea.vmem (%p1075_p6), %s1198_s6, %s830_s8 }
  0x40   : > { %530 = vmatpush1.bf16.msra.mxu0 %v907_v27 }
  0x41   : > { %531 = vmatprep.subr.bf16.mxu0 %v985_v22 }
  0x44   : > { %532 = vmatpush1.bf16.msra.mxu0 %v908_v28 }
  0x45   : > { %533 = vmatprep.subr.bf16.mxu0 %v985_v22 }
  0x48   : > { %534 = vmatpush1.bf16.msra.mxu0 %v909_v29 }
  0x49   : > { %535 = vmatprep.subr.bf16.mxu0 %v985_v22 }
  0x4c   : > { %536 = vmatpush1.bf16.msra.mxu0 %v910_v30 }
  0x4d   : > { %537 = vmatprep.subr.bf16.mxu0 %v985_v22 }
  0x50   : > { %538 = vmatpush1.bf16.msra.mxu0 %v911_v31 }
  0x51   : > { %539 = vmatprep.subr.bf16.mxu0 %v985_v22 }
  0x54   : > { %540 = vmatpush1.bf16.msra.mxu0 %v912_v32 }
  0x55   : > { %541 = vmatprep.subr.bf16.mxu0 %v985_v22 }
  0x58   : > { %542 = vmatpush1.bf16.msra.mxu0 %v913_v33 }
  0x5b   : > { %558 = vmatmul.mubr.bf16.vlgmr.msra.gmra.mrb[0].mxu0 %v811_v34 }
  0xb3   : > { %v459_v37 = vpop.permute.xlu0 %458 }
  0xb5   : > { %v585_v53 = vpop.permute.xlu1 %584 }
  0xb7   : > { %v580_v51 = vpop.permute.xlu0 %579 }
 0x12e   : > { %v559_v38 = vpop.f32.mrb[0].mxu0 }
 0x12f   : > { %v560_v39 = vadd.f32 %v559_v38, %v459_v37  ;;  %v561_v40 = vpop.f32.mrb[1].mxu0 }
 0x130   : > { %v562_v41 = vpop.f32.mrb[2].mxu0 }
 0x131   : > { %v823_v42 = vmul.f32 -1.442695, %v560_v39  ;;  %v563_v43 = vpop.f32.mrb[3].mxu0 }
 0x133   : > { %917 = vpow2.f32 %v823_v42 }
 0x13d   : > { %v918_v44 = vpop.eup %917 }
 0x13e   : > { %v568_v45 = vadd.f32 1.0, %v918_v44 }
 0x140   : > { %919 = vrcp.f32 %v568_v45 }
 0x14a   : > { %v920_v46 = vpop.eup %919 }
 0x14b   : > { %v571_v47 = vmul.f32 %v920_v46, %v560_v39 }
 0x14d   : > { %v574_v48 = vpack.c.bf16 %v571_v47, %v571_v47 }
 0x14f   : > { %v598_v49 = vsel %vm596_vm2, %v574_v48, 0 }
 0x150   : > { %836 = vmatpush3.bf16.msra.mxu1 %v598_v49 }
 0x153   : > { %838 = vmatmul.mubr.msk.bf16.vlgmr.msra.gmra.mrb[0].mxu1 %vm592_vm3, %v916_v50 }
 0x226   : > { %v634_v52 = vpop.f32.mrb[0].mxu1 }
 0x227   : > { %v635_v54 = vadd.f32 %v634_v52, %v580_v51  ;;  %v839_v55 = vpop.f32.mrb[1].mxu1 }
 0x228   : > { %v637_v56 = vpop.f32.mrb[2].mxu1 }
 0x229   : > { %v826_v57 = vmul.f32 -1.442695, %v635_v54  ;;  %v638_v58 = vadd.f32 %v637_v56, %v585_v53  ;;  %v840_v59 = vpop.f32.mrb[3].mxu1 }
 0x22b   : > { %921 = vpow2.f32 %v826_v57  ;;  %v827_v60 = vmul.f32 -1.442695, %v638_v58 }
 0x22d   : > { %923 = vpow2.f32 %v827_v60 }
 0x235   : > { %v922_v61 = vpop.eup %921 }
 0x236   : > { %v647_v62 = vadd.f32 1.0, %v922_v61 }
 0x237   : > { %v924_v63 = vpop.eup %923 }
 0x238   : > { %925 = vrcp.f32 %v647_v62  ;;  %v648_v0 = vadd.f32 1.0, %v924_v63 }
 0x23a   : > { %927 = vrcp.f32 %v648_v0 }
 0x242   : > { %v926_v1 = vpop.eup %925 }
 0x243   : > { %v653_v3 = vmul.f32 %v926_v1, %v635_v54  ;;  %667 = sbr.rel (!%p1075_p6) target bundleno = 594 (0x252), region = 127 }
 0x244   : > { %v928_v4 = vpop.eup %927 }
 0x245   : > { %v657_v6 = vadd.f32 %v655_v2, %v653_v3  ;;  %v654_v7 = vmul.f32 %v928_v4, %v638_v58 }
 0x247   : > { %659 = vst [vmem:[%s434_s7] sm:$0xff] %v657_v6  ;;  %v658_v8 = vadd.f32 %v656_v5, %v654_v7 }
 0x249   : > { %660 = vst [vmem:[%s434_s7 + $0x8] sm:$0xff] %v658_v8 }
 0x24e   : > { %v701_v9 = vld [vmem:[%s434_s7] sm:$0xff] }
 0x24f   : > { %702 = vst [vmem:[%s671_s14] sm:$0xff] %v701_v9 }
 0x250   : > { %v703_v10 = vld [vmem:[%s434_s7 + $0x8] sm:$0xff] }
 0x251   : > { %704 = vst [vmem:[%s671_s14 + $0x10] sm:$0xff] %v703_v10 }
 0x252 PF: > { %s16_s27 = sadd.s32 1, %s983_s27   ;;  %s1201_s21 = smov %s963_s22 }
 0x253   : > { %p13_p12 = scmp.ge.s32.totalorder %s16_s27, 6   ;;  %s1202_s22 = smov %s1083_s13 }
 0x254   : > { %s1203_s23 = smov %s975_s25  ;;  %s1204_s24 = smov %s979_s26 }
 0x255   : > { %s1205_s25 = smov %s1208_s28  ;;  %s1206_s26 = smov %s1212_s29 }
 0x256   :  { %15 = sbr.rel (!%p13_p12) target bundleno = 4 (0x4), region = 204 }

</bundles_post_ra>
